<compile_context>
chip_gen: v6e
topology: v6e:2x2x1
jax: 0.10.0
libtpu: 0.0.40
codegen_flags: <defaults>
</compile_context>

<pallas_src>
import functools

import jax
import jax.numpy as jnp
from jax.experimental import pallas as pl
from jax.experimental.pallas import tpu as pltpu


def _round_up(x: int, m: int) -> int:
    return (x + m - 1) // m * m


def _cdiv(a: int, b: int) -> int:
    return -(-a // b)


# ---------------------------------------------------------------------------
# Kernel: one batch tile; two hidden GEMMs + fused mean|log_std head GEMM.
# ---------------------------------------------------------------------------
def actor_kernel(x_ref, w1_ref, b1_ref, w2_ref, b2_ref, wh_ref, bh_ref,
                 mean_ref, log_std_ref, *extra_refs,
                 action_dim, fuse_sample_tail):
    wdt = w1_ref.dtype                      # bf16 by default (f32 optional)
    # x is already stored in the weight dtype by the wrapper: no per-tile cast.
    h = jnp.dot(x_ref[...], w1_ref[...],
                preferred_element_type=jnp.float32) + b1_ref[...]
    h = jnp.maximum(h, 0.0)
    h = jnp.dot(h.astype(wdt), w2_ref[...],
                preferred_element_type=jnp.float32) + b2_ref[...]
    h = jnp.maximum(h, 0.0)
    # Fused mean|log_std head: one MXU pass, split in-register before storing.
    out = jnp.dot(h.astype(wdt), wh_ref[...],
                  preferred_element_type=jnp.float32) + bh_ref[...]
    mean = out[:, :action_dim]
    log_std = out[:, action_dim:]
    mean_ref[...] = mean.astype(mean_ref.dtype)
    log_std_ref[...] = log_std.astype(log_std_ref.dtype)
    if fuse_sample_tail:
        # Cheap elementwise tail of Actor.sample()/act(): clamp, exp, tanh.
        std_ref, tanh_mean_ref = extra_refs
        ls = jnp.clip(log_std, -20.0, 2.0)
        std_ref[...] = jnp.exp(ls).astype(std_ref.dtype)
        tanh_mean_ref[...] = jnp.tanh(mean).astype(tanh_mean_ref.dtype)


# ---------------------------------------------------------------------------
# Parameter prep: fuse heads; pad only the hidden dim to a multiple of 128.
# ---------------------------------------------------------------------------
def prepare_actor_params(p, weight_dtype=jnp.bfloat16):
    """Raw (in, out) weights / (1, out) biases -> fused, padded kernel params.

    Only the hidden dim is zero-padded (exact) so the big contractions are
    lane-dense; obs_dim and the head width stay at their natural sizes.
    """
    obs_dim, hidden = p["w1"].shape
    action_dim = p["wm"].shape[1]
    hid_p = _round_up(hidden, 128)

    def pad(a, shape):
        return jnp.zeros(shape, a.dtype).at[: a.shape[0], : a.shape[1]].set(a)

    wh = jnp.concatenate([p["wm"], p["ws"]], axis=1)   # (hidden, 2*action_dim)
    bh = jnp.concatenate([p["bm"], p["bs"]], axis=1)   # (1, 2*action_dim)

    return dict(
        w1=pad(p["w1"], (obs_dim, hid_p)).astype(weight_dtype),
        b1=pad(p["b1"], (1, hid_p)).astype(jnp.float32),
        w2=pad(p["w2"], (hid_p, hid_p)).astype(weight_dtype),
        b2=pad(p["b2"], (1, hid_p)).astype(jnp.float32),
        wh=pad(wh, (hid_p, 2 * action_dim)).astype(weight_dtype),
        bh=bh.astype(jnp.float32),
    )


# ---------------------------------------------------------------------------
# Forward wrapper.
# ---------------------------------------------------------------------------
@functools.partial(
    jax.jit, static_argnames=("action_dim", "batch_tile", "fuse_sample_tail"))
def actor_forward(x, kp, *, action_dim, batch_tile=1024, fuse_sample_tail=False):
    """x: (B, obs_dim) float32. kp: output of prepare_actor_params.

    Returns (mean, log_std); with fuse_sample_tail also
    (std, tanh_mean) = (exp(clip(log_std, -20, 2)), tanh(mean)).
    """
    B, obs_dim = x.shape
    hid_p = kp["w1"].shape[1]
    head = kp["wh"].shape[1]                 # 2 * action_dim

    # Balanced batch tiles; >=2 grid steps when B > 8 so ("parallel",) can
    # shard the batch across v7x's two TensorCores.
    n_tiles = max(1, _cdiv(B, batch_tile))
    if B > 8 and n_tiles < 2:
        n_tiles = 2
    bt = _round_up(_cdiv(B, n_tiles), 8)
    B_p = bt * n_tiles

    # bf16 (weight-dtype) activations; only minimal batch padding.
    x_in = x.astype(kp["w1"].dtype)
    if B_p != B:
        x_in = jnp.pad(x_in, ((0, B_p - B), (0, 0)))

    n_out = 4 if fuse_sample_tail else 2
    out_shape = [jax.ShapeDtypeStruct((B_p, action_dim), jnp.float32)] * n_out
    out_specs = [pl.BlockSpec((bt, action_dim), lambda i: (i, 0))] * n_out

    # Weights/biases: whole-array VMEM resident (fetched once, single-buffered).
    resident = pl.BlockSpec(memory_space=pltpu.MemorySpace.VMEM)

    # VMEM budget: double-buffered x / output tiles + resident weights + the
    # f32 hidden intermediates, with 2x headroom; capped at v7x's 64 MiB.
    wbytes = kp["w1"].dtype.itemsize
    vmem_est = (2 * bt * obs_dim * wbytes
                + 2 * bt * action_dim * 4 * n_out
                + (obs_dim * hid_p + hid_p * hid_p + hid_p * head) * wbytes
                + (2 * hid_p + head) * 4
                + 2 * bt * hid_p * 4)
    vmem_limit = int(min(64 << 20, max(2 * vmem_est, 32 << 20)))

    outs = pl.pallas_call(
        functools.partial(actor_kernel, action_dim=action_dim,
                          fuse_sample_tail=fuse_sample_tail),
        grid=(n_tiles,),
        in_specs=[
            pl.BlockSpec((bt, obs_dim), lambda i: (i, 0)),   # x, batch-tiled
            resident, resident,                              # w1, b1
            resident, resident,                              # w2, b2
            resident, resident,                              # wh, bh
        ],
        out_specs=out_specs,
        out_shape=out_shape,
        compiler_params=pltpu.CompilerParams(
            dimension_semantics=("parallel",),
            vmem_limit_bytes=vmem_limit,
        ),
    )(x_in, kp["w1"], kp["b1"], kp["w2"], kp["b2"], kp["wh"], kp["bh"])

    outs = [o[:B] for o in outs]
    if fuse_sample_tail:
        mean, log_std, std, tanh_mean = outs
        return mean, log_std, std, tanh_mean
    mean, log_std = outs
    return mean, log_std


# ---------------------------------------------------------------------------
# Init mimicking nn.Linear (U(-1/sqrt(fan_in), 1/sqrt(fan_in))); weights stored
# as (in, out), i.e. already transposed vs. PyTorch.
# ---------------------------------------------------------------------------
def init_actor_params(key, obs_dim, action_dim, hidden_dim):
    ks = jax.random.split(key, 8)

    def lin(kw, kb, fan_in, fan_out):
        bound = 1.0 / jnp.sqrt(fan_in)
        w = jax.random.uniform(kw, (fan_in, fan_out), jnp.float32, -bound, bound)
        b = jax.random.uniform(kb, (1, fan_out), jnp.float32, -bound, bound)
        return w, b

    w1, b1 = lin(ks[0], ks[1], obs_dim, hidden_dim)
    w2, b2 = lin(ks[2], ks[3], hidden_dim, hidden_dim)
    wm, bm = lin(ks[4], ks[5], hidden_dim, action_dim)
    ws, bs = lin(ks[6], ks[7], hidden_dim, action_dim)
    return dict(w1=w1, b1=b1, w2=w2, b2=b2, wm=wm, bm=bm, ws=ws, bs=bs)


def actor_forward_ref(x, p):
    """Pure f32 PyTorch-semantics reference."""
    h = jnp.maximum(x @ p["w1"] + p["b1"], 0.0)
    h = jnp.maximum(h @ p["w2"] + p["b2"], 0.0)
    return h @ p["wm"] + p["bm"], h @ p["ws"] + p["bs"]


def actor_forward_ref_matched(x, kp, action_dim):
    """Reference that mirrors the kernel's dtypes/casts exactly (bf16 in, f32 acc)."""
    wdt = kp["w1"].dtype
    xb = x.astype(wdt)
    h = jnp.maximum(
        jnp.dot(xb, kp["w1"], preferred_element_type=jnp.float32) + kp["b1"], 0.0)
    h = jnp.maximum(
        jnp.dot(h.astype(wdt), kp["w2"], preferred_element_type=jnp.float32) + kp["b2"], 0.0)
    out = jnp.dot(h.astype(wdt), kp["wh"], preferred_element_type=jnp.float32) + kp["bh"]
    return out[:, :action_dim], out[:, action_dim:]


if __name__ == "__main__":
    # Small, forward-consistent shapes.
    batch, obs_dim, action_dim, hidden_dim = 8, 32, 8, 32

    key = jax.random.PRNGKey(0)
    kx, kp_key = jax.random.split(key)
    x = jax.random.normal(kx, (batch, obs_dim), jnp.float32)
    params = init_actor_params(kp_key, obs_dim, action_dim, hidden_dim)

    # bf16 weights by default (native MXU rate, half the weight DMA).
    kparams = prepare_actor_params(params)

    mean, log_std, std, tanh_mean = actor_forward(
        x, kparams, action_dim=action_dim, fuse_sample_tail=True)
    mean = jax.block_until_ready(mean)
    log_std = jax.block_until_ready(log_std)
    std = jax.block_until_ready(std)
    tanh_mean = jax.block_until_ready(tanh_mean)

    # Tight check vs. a reference using the identical bf16 params / casts.
    mean_m, log_std_m = actor_forward_ref_matched(x, kparams, action_dim)
    std_m = jnp.exp(jnp.clip(log_std_m, -20.0, 2.0))
    tanh_mean_m = jnp.tanh(mean_m)

    assert mean.shape == (batch, action_dim) and log_std.shape == (batch, action_dim)
    assert jnp.allclose(mean, mean_m, atol=1e-3, rtol=1e-3)
    assert jnp.allclose(log_std, log_std_m, atol=1e-3, rtol=1e-3)
    assert jnp.allclose(std, std_m, atol=2e-3, rtol=2e-3)
    assert jnp.allclose(tanh_mean, tanh_mean_m, atol=2e-3, rtol=2e-3)

    # Loose check vs. the f32 PyTorch-semantics reference (bf16 roundoff only).
    mean_f32, log_std_f32 = actor_forward_ref(x, params)
    assert jnp.allclose(mean, mean_f32, atol=5e-2, rtol=5e-2)
    assert jnp.allclose(log_std, log_std_f32, atol=5e-2, rtol=5e-2)

    # TODO(synk): Normal.rsample()/log_prob in Actor.sample() need RNG draws;
    # only the deterministic clamp/exp/tanh tail is fused into the kernel.

    print("KERNEL_OK")
</pallas_src>

<mosaic_0001>
module attributes {stable_mosaic.version = 11 : i64} {
  func.func @actor_kernel(%arg0: i32, %arg1: memref<8x32xbf16, #tpu.memory_space<vmem>>, %arg2: memref<32x128xbf16, #tpu.memory_space<vmem>>, %arg3: memref<1x128xf32, #tpu.memory_space<vmem>>, %arg4: memref<128x128xbf16, #tpu.memory_space<vmem>>, %arg5: memref<1x128xf32, #tpu.memory_space<vmem>>, %arg6: memref<128x16xbf16, #tpu.memory_space<vmem>>, %arg7: memref<1x16xf32, #tpu.memory_space<vmem>>, %arg8: memref<8x8xf32, #tpu.memory_space<vmem>>, %arg9: memref<8x8xf32, #tpu.memory_space<vmem>>, %arg10: memref<8x8xf32, #tpu.memory_space<vmem>>, %arg11: memref<8x8xf32, #tpu.memory_space<vmem>>) attributes {dimension_semantics = [#tpu.dimension_semantics<parallel>], iteration_bounds = array<i64: 1>, scalar_prefetch = 0 : i64, scratch_operands = 0 : i64, tpu.core_type = #tpu.core_type<tc>, window_params = [{transform_indices = @transform_0, window_bounds = array<i64: 8, 32>}, {pipeline_mode = #tpu.pipeline_mode<synchronous>, transform_indices = @transform_1, window_bounds = array<i64: 32, 128>}, {pipeline_mode = #tpu.pipeline_mode<synchronous>, transform_indices = @transform_2, window_bounds = array<i64: 1, 128>}, {pipeline_mode = #tpu.pipeline_mode<synchronous>, transform_indices = @transform_3, window_bounds = array<i64: 128, 128>}, {pipeline_mode = #tpu.pipeline_mode<synchronous>, transform_indices = @transform_4, window_bounds = array<i64: 1, 128>}, {pipeline_mode = #tpu.pipeline_mode<synchronous>, transform_indices = @transform_5, window_bounds = array<i64: 128, 16>}, {pipeline_mode = #tpu.pipeline_mode<synchronous>, transform_indices = @transform_6, window_bounds = array<i64: 1, 16>}, {transform_indices = @transform_7, window_bounds = array<i64: 8, 8>}, {transform_indices = @transform_8, window_bounds = array<i64: 8, 8>}, {transform_indices = @transform_9, window_bounds = array<i64: 8, 8>}, {transform_indices = @transform_10, window_bounds = array<i64: 8, 8>}]} {
    %c0 = arith.constant 0 : index
    %c0_0 = arith.constant 0 : index
    %0 = vector.load %arg1[%c0, %c0_0] : memref<8x32xbf16, #tpu.memory_space<vmem>>, vector<8x32xbf16>
    %c0_1 = arith.constant 0 : index
    %c0_2 = arith.constant 0 : index
    %1 = vector.load %arg2[%c0_1, %c0_2] : memref<32x128xbf16, #tpu.memory_space<vmem>>, vector<32x128xbf16>
    %cst = arith.constant dense<0.000000e+00> : vector<8x128xf32>
    %2 = tpu.matmul %0, %1, %cst {dimension_numbers = #tpu.dot_dimension_numbers<[1], [0], [0], [1], [0, 0, 1, 1], [], []>} : vector<8x32xbf16>, vector<32x128xbf16>, vector<8x128xf32> -> vector<8x128xf32>
    %c0_3 = arith.constant 0 : index
    %c0_4 = arith.constant 0 : index
    %3 = vector.load %arg3[%c0_3, %c0_4] : memref<1x128xf32, #tpu.memory_space<vmem>>, vector<1x128xf32>
    %4 = vector.broadcast %3 : vector<1x128xf32> to vector<8x128xf32>
    %5 = arith.addf %2, %4 : vector<8x128xf32>
    %cst_5 = arith.constant 0.000000e+00 : f32
    %6 = vector.broadcast %cst_5 : f32 to vector<8x128xf32>
    %7 = arith.maximumf %5, %6 : vector<8x128xf32>
    %8 = arith.truncf %7 : vector<8x128xf32> to vector<8x128xbf16>
    %c0_6 = arith.constant 0 : index
    %c0_7 = arith.constant 0 : index
    %9 = vector.load %arg4[%c0_6, %c0_7] : memref<128x128xbf16, #tpu.memory_space<vmem>>, vector<128x128xbf16>
    %cst_8 = arith.constant dense<0.000000e+00> : vector<8x128xf32>
    %10 = tpu.matmul %8, %9, %cst_8 {dimension_numbers = #tpu.dot_dimension_numbers<[1], [0], [0], [1], [0, 0, 1, 1], [], []>} : vector<8x128xbf16>, vector<128x128xbf16>, vector<8x128xf32> -> vector<8x128xf32>
    %c0_9 = arith.constant 0 : index
    %c0_10 = arith.constant 0 : index
    %11 = vector.load %arg5[%c0_9, %c0_10] : memref<1x128xf32, #tpu.memory_space<vmem>>, vector<1x128xf32>
    %12 = vector.broadcast %11 : vector<1x128xf32> to vector<8x128xf32>
    %13 = arith.addf %10, %12 : vector<8x128xf32>
    %cst_11 = arith.constant 0.000000e+00 : f32
    %14 = vector.broadcast %cst_11 : f32 to vector<8x128xf32>
    %15 = arith.maximumf %13, %14 : vector<8x128xf32>
    %16 = arith.truncf %15 : vector<8x128xf32> to vector<8x128xbf16>
    %c0_12 = arith.constant 0 : index
    %c0_13 = arith.constant 0 : index
    %17 = vector.load %arg6[%c0_12, %c0_13] : memref<128x16xbf16, #tpu.memory_space<vmem>>, vector<128x16xbf16>
    %cst_14 = arith.constant dense<0.000000e+00> : vector<8x16xf32>
    %18 = tpu.matmul %16, %17, %cst_14 {dimension_numbers = #tpu.dot_dimension_numbers<[1], [0], [0], [1], [0, 0, 1, 1], [], []>} : vector<8x128xbf16>, vector<128x16xbf16>, vector<8x16xf32> -> vector<8x16xf32>
    %c0_15 = arith.constant 0 : index
    %c0_16 = arith.constant 0 : index
    %19 = vector.load %arg7[%c0_15, %c0_16] : memref<1x16xf32, #tpu.memory_space<vmem>>, vector<1x16xf32>
    %20 = vector.broadcast %19 : vector<1x16xf32> to vector<8x16xf32>
    %21 = arith.addf %18, %20 : vector<8x16xf32>
    %22 = vector.extract_strided_slice %21 {offsets = [0, 0], sizes = [8, 8], strides = [1, 1]} : vector<8x16xf32> to vector<8x8xf32>
    %23 = vector.extract_strided_slice %21 {offsets = [0, 8], sizes = [8, 8], strides = [1, 1]} : vector<8x16xf32> to vector<8x8xf32>
    %c0_17 = arith.constant 0 : index
    %c0_18 = arith.constant 0 : index
    %24 = vector.load %arg8[%c0_17, %c0_18] : memref<8x8xf32, #tpu.memory_space<vmem>>, vector<8x8xf32>
    tpu.vector_store %arg8[%c0_17, %c0_18], %22 {strides = array<i32>} : memref<8x8xf32, #tpu.memory_space<vmem>>, vector<8x8xf32>,
    %c0_19 = arith.constant 0 : index
    %c0_20 = arith.constant 0 : index
    %25 = vector.load %arg9[%c0_19, %c0_20] : memref<8x8xf32, #tpu.memory_space<vmem>>, vector<8x8xf32>
    tpu.vector_store %arg9[%c0_19, %c0_20], %23 {strides = array<i32>} : memref<8x8xf32, #tpu.memory_space<vmem>>, vector<8x8xf32>,
    %cst_21 = arith.constant -2.000000e+01 : f32
    %cst_22 = arith.constant 2.000000e+00 : f32
    %26 = vector.broadcast %cst_21 : f32 to vector<8x8xf32>
    %27 = arith.maximumf %26, %23 : vector<8x8xf32>
    %28 = vector.broadcast %cst_22 : f32 to vector<8x8xf32>
    %29 = arith.minimumf %28, %27 : vector<8x8xf32>
    %30 = math.exp %29 : vector<8x8xf32>
    %c0_23 = arith.constant 0 : index
    %c0_24 = arith.constant 0 : index
    %31 = vector.load %arg10[%c0_23, %c0_24] : memref<8x8xf32, #tpu.memory_space<vmem>>, vector<8x8xf32>
    tpu.vector_store %arg10[%c0_23, %c0_24], %30 {strides = array<i32>} : memref<8x8xf32, #tpu.memory_space<vmem>>, vector<8x8xf32>,
    %32 = math.tanh %22 : vector<8x8xf32>
    %c0_25 = arith.constant 0 : index
    %c0_26 = arith.constant 0 : index
    %33 = vector.load %arg11[%c0_25, %c0_26] : memref<8x8xf32, #tpu.memory_space<vmem>>, vector<8x8xf32>
    tpu.vector_store %arg11[%c0_25, %c0_26], %32 {strides = array<i32>} : memref<8x8xf32, #tpu.memory_space<vmem>>, vector<8x8xf32>,
    return
  }
  func.func @transform_0(%arg0: i32) -> (i32, i32) {
    %c0_i32 = arith.constant 0 : i32
    %c0_i32_0 = arith.constant 0 : i32
    return %arg0, %c0_i32 : i32, i32
  }
  func.func @transform_1(%arg0: i32) -> (i32, i32) {
    %c0_i32 = arith.constant 0 : i32
    %c0_i32_0 = arith.constant 0 : i32
    %c0_i32_1 = arith.constant 0 : i32
    return %c0_i32, %c0_i32_0 : i32, i32
  }
  func.func @transform_2(%arg0: i32) -> (i32, i32) {
    %c0_i32 = arith.constant 0 : i32
    %c0_i32_0 = arith.constant 0 : i32
    %c0_i32_1 = arith.constant 0 : i32
    return %c0_i32, %c0_i32_0 : i32, i32
  }
  func.func @transform_3(%arg0: i32) -> (i32, i32) {
    %c0_i32 = arith.constant 0 : i32
    %c0_i32_0 = arith.constant 0 : i32
    %c0_i32_1 = arith.constant 0 : i32
    return %c0_i32, %c0_i32_0 : i32, i32
  }
  func.func @transform_4(%arg0: i32) -> (i32, i32) {
    %c0_i32 = arith.constant 0 : i32
    %c0_i32_0 = arith.constant 0 : i32
    %c0_i32_1 = arith.constant 0 : i32
    return %c0_i32, %c0_i32_0 : i32, i32
  }
  func.func @transform_5(%arg0: i32) -> (i32, i32) {
    %c0_i32 = arith.constant 0 : i32
    %c0_i32_0 = arith.constant 0 : i32
    %c0_i32_1 = arith.constant 0 : i32
    return %c0_i32, %c0_i32_0 : i32, i32
  }
  func.func @transform_6(%arg0: i32) -> (i32, i32) {
    %c0_i32 = arith.constant 0 : i32
    %c0_i32_0 = arith.constant 0 : i32
    %c0_i32_1 = arith.constant 0 : i32
    return %c0_i32, %c0_i32_0 : i32, i32
  }
  func.func @transform_7(%arg0: i32) -> (i32, i32) {
    %c0_i32 = arith.constant 0 : i32
    %c0_i32_0 = arith.constant 0 : i32
    return %arg0, %c0_i32 : i32, i32
  }
  func.func @transform_8(%arg0: i32) -> (i32, i32) {
    %c0_i32 = arith.constant 0 : i32
    %c0_i32_0 = arith.constant 0 : i32
    return %arg0, %c0_i32 : i32, i32
  }
  func.func @transform_9(%arg0: i32) -> (i32, i32) {
    %c0_i32 = arith.constant 0 : i32
    %c0_i32_0 = arith.constant 0 : i32
    return %arg0, %c0_i32 : i32, i32
  }
  func.func @transform_10(%arg0: i32) -> (i32, i32) {
    %c0_i32 = arith.constant 0 : i32
    %c0_i32_0 = arith.constant 0 : i32
    return %arg0, %c0_i32 : i32, i32
  }
}

</mosaic_0001>

<bundles_post_ra>
// kernel: actor_forward.1
= control target key start
LH: loop header
LB: loop body
LE: loop exit
PB: predicated region body
PF: predicated region fallthrough
CT: control target
= control target key end

     0   :  { %16 = vsyncpa [#allocation3], 0  ;;  %s777_s0 = inlined_call_operand.vmem [shape: bf16[8,32], index: 0, kind: input, shape index: {}]   ;;  %s778_s1 = inlined_call_operand.vmem [shape: bf16[32,128], index: 1, kind: input, shape index: {}]   ;;  %s779_s2 = inlined_call_operand.vmem [shape: f32[1,128], index: 2, kind: input, shape index: {}]   ;;  %s780_s3 = inlined_call_operand.vmem [shape: bf16[128,128], index: 3, kind: input, shape index: {}]   ;;  %s781_s4 = inlined_call_operand.vmem [shape: f32[1,128], index: 4, kind: input, shape index: {}]   ;;  %s782_s5 = inlined_call_operand.vmem [shape: bf16[128,16], index: 5, kind: input, shape index: {}]   ;;  %s783_s6 = inlined_call_operand.vmem [shape: f32[1,16], index: 6, kind: input, shape index: {}]   ;;  %s784_s7 = inlined_call_operand.hbm [shape: f32[8,8], index: 7, kind: output, shape index: {0}]   ;;  %s785_s8 = inlined_call_operand.hbm [shape: f32[8,8], index: 8, kind: output, shape index: {1}]   ;;  %s786_s9 = inlined_call_operand.hbm [shape: f32[8,8], index: 9, kind: output, shape index: {2}]   ;;  %s787_s10 = inlined_call_operand.hbm [shape: f32[8,8], index: 10, kind: output, shape index: {3}]  }
   0x1   :  { %17 = vsyncpa [#allocation5], 0  ;;  %v499_v0 = vld [vmem:[%s778_s1 + $0x8] sm:$0xff]   ;;  %v607_v1 = vmov 0.0   ;;  %v500_v2 = vld [vmem:[%s778_s1] sm:$0xff]   ;;  %vm608_vm0 = vmmov 0  }
   0x2   :  { %444 = vmatprep.subr.bf16.mxu0 %v607_v1  ;;  %452 = vmatprep.subr.bf16.mxu1 %v607_v1  ;;  %v501_v3 = vld [vmem:[%s780_s3 + $0x38] sm:$0xff]   ;;  %v502_v4 = vld [vmem:[%s780_s3 + $0x30] sm:$0xff]   ;;  %v34_v5 = vld [vmem:[%s777_s0] sm:$0xf]  ;;  %vm58_vm1 = vcmask 261120  }
   0x3   :  { %445 = vmatpush3.bf16.msra.mxu0 %v499_v0  ;;  %448 = vmatprep.mubr.msk.bf16.mxu0 %vm608_vm0, %v607_v1  ;;  %v503_v6 = vld [vmem:[%s780_s3 + $0x28] sm:$0xff]   ;;  %v504_v7 = vld [vmem:[%s780_s3 + $0x20] sm:$0xff]  }
   0x4   :  { %446 = vmatprep.subr.bf16.mxu0 %v607_v1  ;;  %468 = vmatprep.mubr.msk.bf16.mxu1 %vm608_vm0, %v607_v1 }
   0x5   :  { %453 = vmatpush3.bf16.msra.mxu1 %v501_v3 }
   0x6   :  { %454 = vmatprep.subr.bf16.mxu1 %v607_v1 }
   0x7   :  { %447 = vmatpush3.bf16.msra.mxu0 %v500_v2 }
   0x8   :  { %472 = vmatprep.subr.bf16.mxu0 %v607_v1 }
   0x9   :  { %455 = vmatpush3.bf16.msra.mxu1 %v502_v4 }
   0xa   :  { %449 = vmatmul.mubr.msk.bf16.vlgmr.msra.gmra.mxu0 %vm58_vm1, %v34_v5  ;;  %456 = vmatprep.subr.bf16.mxu1 %v607_v1 }
   0xb   :  { %488 = vmatprep.mubr.msk.bf16.mxu0 %vm608_vm0, %v607_v1 }
   0xd   :  { %457 = vmatpush3.bf16.msra.mxu1 %v503_v6 }
   0xe   :  { %458 = vmatprep.subr.bf16.mxu1 %v607_v1 }
   0xf   :  { %18 = vsyncpa [#allocation8], 0  ;;  %v505_v8 = vld [vmem:[%s780_s3 + $0x18] sm:$0xff]   ;;  %v506_v9 = vld [vmem:[%s780_s3 + $0x10] sm:$0xff]   ;;  %vm328_vm2 = vcmask 64512  }
  0x10   :  { %v507_v10 = vld [vmem:[%s780_s3 + $0x8] sm:$0xff]   ;;  %v508_v11 = vld [vmem:[%s780_s3] sm:$0xff]   ;;  %v509_v12 = vld [vmem:[%s782_s5 + $0x38] sm:$0xff]  }
  0x11   :  { %459 = vmatpush3.bf16.msra.mxu1 %v504_v7  ;;  %473 = vmatpush3.bf16.msra.mxu0 %v509_v12  ;;  %v510_v13 = vld [vmem:[%s782_s5 + $0x30] sm:$0xff]   ;;  %v511_v14 = vld [vmem:[%s782_s5 + $0x28] sm:$0xff]   ;;  %v512_v15 = vld [vmem:[%s782_s5 + $0x20] sm:$0xff]  }
  0x12   :  { %460 = vmatprep.subr.bf16.mxu1 %v607_v1  ;;  %474 = vmatprep.subr.bf16.mxu0 %v607_v1  ;;  %v513_v16 = vld [vmem:[%s782_s5 + $0x18] sm:$0xff]   ;;  %v514_v17 = vld [vmem:[%s782_s5 + $0x10] sm:$0xff]   ;;  %v401_v18 = vld [vmem:[%s779_s2] ss:$0 sm:$0xff] }
  0x13   :  { %v515_v26 = vld [vmem:[%s782_s5 + $0x8] sm:$0xff]   ;;  %v516_v27 = vld [vmem:[%s782_s5] sm:$0xff]   ;;  %s609_s5 = smov 120  }
  0x14   :  { %v405_v28 = vld [vmem:[%s781_s4] ss:$0 sm:$0xff]  ;;  %s610_s4 = smov [#allocation2]  }
  0x15   :  { %461 = vmatpush3.bf16.msra.mxu1 %v505_v8  ;;  %475 = vmatpush3.bf16.msra.mxu0 %v510_v13  ;;  %v414_v36 = vld [vmem:[%s783_s6] ss:$0 sm:$0xff]  ;;  %s352_s11 = sshll.u32 %s610_s4, 4  ;;  %s353_s11 = int_to_ptr.vmem [resolvable:$true] %s352_s11 }
  0x16   :  { %462 = vmatprep.subr.bf16.mxu1 %v607_v1  ;;  %476 = vmatprep.subr.bf16.mxu0 %v607_v1  ;;  %s521_s6 = scalar_lea.vmem %s353_s11, 128  ;;  %p526_p1 = scmp.lt.s32.totalorder %s353_s11, %s353_s11 }
  0x17   :  { %p522_p0 = scmp.ne.s32.totalorder %s353_s11, %s521_s6  ;;  %p527_p2 = scmp.lt.s32.totalorder %s521_s6, %s521_s6 }
  0x19   :  { %463 = vmatpush3.bf16.msra.mxu1 %v506_v9  ;;  %477 = vmatpush3.bf16.msra.mxu0 %v511_v14  ;;  %p528_p3 = por %p527_p2, %p526_p1 }
  0x1a   :  { %464 = vmatprep.subr.bf16.mxu1 %v607_v1  ;;  %478 = vmatprep.subr.bf16.mxu0 %v607_v1 }
  0x1b   :  { %p529_p4 = pnand %p528_p3, %p522_p0 }
  0x1d   :  { %465 = vmatpush3.bf16.msra.mxu1 %v507_v10  ;;  %479 = vmatpush3.bf16.msra.mxu0 %v512_v15 }
  0x1e   :  { %466 = vmatprep.subr.bf16.mxu1 %v607_v1  ;;  %480 = vmatprep.subr.bf16.mxu0 %v607_v1 }
  0x21   :  { %467 = vmatpush3.bf16.msra.mxu1 %v508_v11  ;;  %481 = vmatpush3.bf16.msra.mxu0 %v513_v16 }
  0x22   :  { %482 = vmatprep.subr.bf16.mxu0 %v607_v1 }
  0x25   :  { %483 = vmatpush3.bf16.msra.mxu0 %v514_v17 }
  0x26   :  { %484 = vmatprep.subr.bf16.mxu0 %v607_v1 }
  0x29   :  { %485 = vmatpush3.bf16.msra.mxu0 %v515_v26 }
  0x2a   :  { %486 = vmatprep.subr.bf16.mxu0 %v607_v1 }
  0x2d   :  { %487 = vmatpush3.bf16.msra.mxu0 %v516_v27 }
  0xca   :  { %v96_v19 = vpop.f32.mrf.mxu0 }
  0xcb   :  { %v97_v20 = vadd.f32 %v401_v18, %v96_v19 }
  0xcc   :  { %v450_v21 = vpop.f32.mrf.mxu0 }
  0xcd   :  { %v102_v22 = vmax.f32 %v97_v20, 0.0 }
  0xce   :  { %v99_v23 = vpop.f32.mrf.mxu0 }
  0xcf   :  { %v103_v24 = vpack.c.bf16 %v102_v22, %v102_v22 }
  0xd0   :  { %v451_v25 = vpop.f32.mrf.mxu0 }
  0xd1   :  { %469 = vmatmul.mubr.bf16.vlgmr.msra.gmra.mxu1 %v103_v24 }
 0x191   :  { %v209_v29 = vpop.f32.mrf.mxu1 }
 0x192   :  { %v210_v30 = vadd.f32 %v405_v28, %v209_v29 }
 0x193   :  { %v470_v31 = vpop.f32.mrf.mxu1 }
 0x194   :  { %v215_v32 = vmax.f32 %v210_v30, 0.0 }
 0x195   :  { %v212_v33 = vpop.f32.mrf.mxu1 }
 0x196   :  { %v216_v34 = vpack.c.bf16 %v215_v32, %v215_v32 }
 0x197   :  { %v471_v35 = vpop.f32.mrf.mxu1 }
 0x198   :  { %489 = vmatmul.mubr.bf16.vlgmr.msra.gmra.mxu0 %v216_v34 }
 0x258   :  { %v322_v37 = vpop.f32.mrf.mxu0 }
 0x259   :  { %v323_v38 = vadd.f32 %v414_v36, %v322_v37 }
 0x25a   :  { %v490_v39 = vpop.f32.mrf.mxu0 }
 0x25b   :  { %v335_v40 = vmax.f32 %v323_v38, -20.0  ;;  %517 = vtanh.f32 %v323_v38  ;;  %331 = vrot.lane.b32.xlu0 %v323_v38, %s609_s5  ;;  %329 = vst.msk [vmem:[#allocation2] sm:$0xff] %vm328_vm2, %v323_v38 }
 0x25c   :  { %v325_v41 = vpop.f32.mrf.mxu0 }
 0x25d   :  { %v336_v42 = vmin.f32 %v335_v40, 2.0 }
 0x25e   :  { %v491_v43 = vpop.f32.mrf.mxu0 }
 0x25f   :  { %v337_v44 = vmul.f32 1.442695, %v336_v42 }
 0x261   :  { %519 = vpow2.f32 %v337_v44 }
 0x262   :  { %532 = shalt.err (!%p529_p4)
}
 0x263   :  { %355 = dma.vmem_to_hbm [thread:$0]  %s353_s11, 128, %s784_s7, [#allocation3]  }
 0x264   :  { %s611_s14 = smov [#allocation7]  }
 0x265   :  { %s382_s15 = sshll.u32 %s611_s14, 4  ;;  %s383_s15 = int_to_ptr.vmem [resolvable:$true] %s382_s15 }
 0x266   :  { %s541_s16 = scalar_lea.vmem %s383_s15, 128  ;;  %p546_p6 = scmp.lt.s32.totalorder %s383_s15, %s383_s15 }
 0x267   :  { %p542_p5 = scmp.ne.s32.totalorder %s383_s15, %s541_s16  ;;  %p547_p7 = scmp.lt.s32.totalorder %s541_s16, %s541_s16 }
 0x268   :  { %v518_v45 = vpop.eup %517 }
 0x269   :  { %345 = vst.msk [vmem:[#allocation7] sm:$0xff] %vm328_vm2, %v518_v45  ;;  %p548_p8 = por %p547_p7, %p546_p6 }
 0x26b   :  { %p549_p9 = pnand %p548_p8, %p542_p5 }
 0x26d   :  { %552 = shalt.err (!%p549_p9)
}
 0x26e   :  { %385 = dma.vmem_to_hbm [thread:$0]  %s383_s15, 128, %s787_s10, [#allocation8]   ;;  %v520_v46 = vpop.eup %519 }
 0x26f   :  { %340 = vrot.lane.b32.xlu0 %v520_v46, %s609_s5  ;;  %s612_s7 = smov [#allocation4]  }
 0x270   :  { %s362_s3 = sshll.u32 %s612_s7, 4  ;;  %s363_s3 = int_to_ptr.vmem [resolvable:$true] %s362_s3 }
 0x271   :  { %s561_s19 = scalar_lea.vmem %s363_s3, 128  ;;  %p566_p11 = scmp.lt.s32.totalorder %s363_s3, %s363_s3 }
 0x272   :  { %p562_p10 = scmp.ne.s32.totalorder %s363_s3, %s561_s19  ;;  %p567_p12 = scmp.lt.s32.totalorder %s561_s19, %s561_s19 }
 0x274   :  { %p568_p13 = por %p567_p12, %p566_p11 }
 0x276   :  { %p569_p0 = pnand %p568_p13, %p562_p10 }
 0x2cd   :  { %v332_v47 = vpop.permute.xlu0 %331 }
 0x2ce   :  { %334 = vst.msk [vmem:[#allocation4] sm:$0xff] %vm328_vm2, %v332_v47 }
 0x2cf   :  { %572 = shalt.err (!%p569_p0)
}
 0x2d0   :  { %365 = dma.vmem_to_hbm [thread:$0]  %s363_s3, 128, %s785_s8, [#allocation5]  }
 0x2d1   :  { %s613_s10 = smov [#allocation6]  }
 0x2d2   :  { %s372_s1 = sshll.u32 %s613_s10, 4  ;;  %s373_s1 = int_to_ptr.vmem [resolvable:$true] %s372_s1 }
 0x2d3   :  { %s581_s22 = scalar_lea.vmem %s373_s1, 128  ;;  %p586_p2 = scmp.lt.s32.totalorder %s373_s1, %s373_s1 }
 0x2d4   :  { %p582_p1 = scmp.ne.s32.totalorder %s373_s1, %s581_s22  ;;  %p587_p3 = scmp.lt.s32.totalorder %s581_s22, %s581_s22 }
 0x2d6   :  { %p588_p4 = por %p587_p3, %p586_p2 }
 0x2d8   :  { %p589_p5 = pnand %p588_p4, %p582_p1 }
 0x2e1   :  { %v341_v48 = vpop.permute.xlu0 %340 }
 0x2e2   :  { %343 = vst.msk [vmem:[#allocation6] sm:$0xff] %vm328_vm2, %v341_v48 }
 0x2e3   :  { %592 = shalt.err (!%p589_p5)
}
 0x2e4   :  { %375 = dma.vmem_to_hbm [thread:$0]  %s373_s1, 128, %s786_s9, [#allocation5]  }
 0x2e5   :  { %601 = dma.done.wait [#allocation3], 128  }
 0x2e6   :  { %602 = vsyncadd [#allocation3], 4294967168 }
 0x2e7   :  { %603 = dma.done.wait [#allocation5], 256  }
 0x2e8   :  { %604 = vsyncadd [#allocation5], 4294967040 }
 0x2e9   :  { %605 = dma.done.wait [#allocation8], 128  }
 0x2ea   :  { %606 = vsyncadd [#allocation8], 4294967168 }
 0x2eb   :  { %398 = vsyncpa [#allocation3], 1 }
 0x2ec   :  { %399 = vsyncpa [#allocation5], 1 }
 0x2ed   :  { %400 = vsyncpa [#allocation8], 1 }

</bundles_post_ra>
